<compile_context>
chip_gen: v7x
topology: tpu7x:2x2x1
jax: 0.10.0
libtpu: 0.0.40
codegen_flags: <defaults>
</compile_context>

<pallas_src>
import functools

import jax
import jax.numpy as jnp
from jax.experimental import pallas as pl
from jax.experimental.pallas import tpu as pltpu

_LANES = 128
_SUBLANES = 8
_CHUNK_M = 256                      # rows per inner strip: 256*128*4B = 128 KiB f32
_MAX_TILE_M = 8192                  # rows per grid step:  4 MiB f32 per input block
_VMEM_LIMIT = 32 * 1024 * 1024


def _num_tensorcores_per_chip() -> int:
    """2 on v7x (2 TensorCores / chip); 1 on v5e / v6e and on failure."""
    try:
        kind = jax.devices()[0].device_kind.lower()
    except Exception:
        return 1
    return 2 if "7" in kind else 1


def _asym_loss_kernel(pred_ref, target_ref, out_ref, *, alpha, tile_m, chunk_m,
                      m_rows, tiles_per_split, may_be_ragged):
    """One grid step: fold a (tile_m, 128) tile into the split's (8, 128) partials."""
    s = pl.program_id(0)   # parallel split (sharded across TCs on v7x)
    j = pl.program_id(1)   # serial reduction step within the split

    @pl.when(j == 0)
    def _():
        out_ref[...] = jnp.zeros_like(out_ref)

    alpha_f = jnp.float32(alpha)
    om_alpha = jnp.float32(1.0 - alpha)
    n_chunks = tile_m // chunk_m

    def partial_sums(masked, row0):
        """Strip-mined reduce of this tile into one (8, 128) f32 accumulator."""
        def body(c, acc):
            start = pl.multiple_of(c * chunk_m, chunk_m)
            p = pred_ref[pl.ds(start, chunk_m), :].astype(jnp.float32)
            t = target_ref[pl.ds(start, chunk_m), :].astype(jnp.float32)
            d = p - t
            # Single select instead of mask/weights arithmetic.
            wsq = jnp.where(d < 0, om_alpha, alpha_f) * d * d
            if masked:
                # Global row of each element; rows >= m_rows (ragged edge or a
                # clamped duplicate tile) contribute exactly 0. Select (not
                # multiply) so garbage/NaN rows cannot poison the sum.
                rows = (row0 + start
                        + jax.lax.broadcasted_iota(jnp.int32, (chunk_m, _LANES), 0))
                wsq = jnp.where(rows < m_rows, wsq, 0.0)
            # (chunk_m,128) -> (chunk_m/8, 8, 128); sum over leading axis is pure
            # elementwise VPU adds (no per-step XLU full-reduce).
            return acc + wsq.reshape(chunk_m // _SUBLANES, _SUBLANES, _LANES).sum(axis=0)

        return jax.lax.fori_loop(0, n_chunks, body,
                                 jnp.zeros((_SUBLANES, _LANES), jnp.float32),
                                 unroll=min(2, n_chunks))

    if may_be_ragged:
        row0 = (s * tiles_per_split + j) * tile_m
        is_ragged = row0 + tile_m > m_rows

        @pl.when(jnp.logical_not(is_ragged))
        def _():
            out_ref[...] += partial_sums(False, row0)   # mask-free hot path

        @pl.when(is_ragged)
        def _():
            out_ref[...] += partial_sums(True, row0)    # only the edge tile(s)
    else:
        out_ref[...] += partial_sums(False, 0)


def asymmetric_loss(pred: jax.Array, target: jax.Array, alpha: float = 0.3) -> jax.Array:
    """Pallas-backed equivalent of AsymmetricLoss.forward(pred, target)."""
    assert pred.shape == target.shape
    n_elems = pred.size

    # Flatten: free view for contiguous tensors; keep native dtype (upcast in-kernel).
    p_flat = pred.reshape(-1)
    t_flat = target.reshape(-1)

    # Tiny inputs: pad to one full (8,128) multiple (negligible copy, zeros add 0).
    # Large inputs: zero-copy whenever n_elems % 128 == 0 (the common case for
    # (B,C,H,W) noise maps); ragged rows are masked in-kernel instead of padded.
    small = n_elems <= _CHUNK_M * _LANES
    align = _SUBLANES * _LANES if small else _LANES
    pad = (-n_elems) % align
    if pad:
        # TODO(synk): for large non-128-aligned inputs, fold the <128-element tail
        # in-kernel (or via a tiny XLA reduce) to avoid this O(N) pad copy.
        p_flat = jnp.pad(p_flat, (0, pad))
        t_flat = jnp.pad(t_flat, (0, pad))

    m_rows = p_flat.size // _LANES
    p2 = p_flat.reshape(m_rows, _LANES)
    t2 = t_flat.reshape(m_rows, _LANES)

    if small:
        tile_m = m_rows                                   # multiple of 8
        chunk_m = m_rows
    else:
        tile_m = min(_MAX_TILE_M, (m_rows // _CHUNK_M) * _CHUNK_M)
        chunk_m = _CHUNK_M

    total_tiles = pl.cdiv(m_rows, tile_m)
    n_splits = 2 if (_num_tensorcores_per_chip() == 2 and total_tiles >= 2) else 1
    tiles_per_split = pl.cdiv(total_tiles, n_splits)
    clamped = n_splits * tiles_per_split != total_tiles
    ragged = total_tiles * tile_m != m_rows
    may_be_ragged = clamped or ragged

    if clamped:
        # Clamp fully out-of-range logical tiles onto the last real tile; the
        # kernel's runtime row mask zeroes their contribution.
        def in_map(s, j):
            return (jnp.minimum(s * tiles_per_split + j, total_tiles - 1), 0)
    else:
        def in_map(s, j):
            return (s * tiles_per_split + j, 0)

    kernel = functools.partial(
        _asym_loss_kernel, alpha=float(alpha), tile_m=tile_m, chunk_m=chunk_m,
        m_rows=m_rows, tiles_per_split=tiles_per_split, may_be_ragged=may_be_ragged)

    bytes_accessed = (p2.size * p2.dtype.itemsize + t2.size * t2.dtype.itemsize
                      + n_splits * _SUBLANES * _LANES * 4)
    cost = pl.CostEstimate(flops=4 * n_elems, transcendentals=0,
                           bytes_accessed=bytes_accessed)

    partials = pl.pallas_call(
        kernel,
        out_shape=jax.ShapeDtypeStruct((n_splits * _SUBLANES, _LANES), jnp.float32),
        grid_spec=pltpu.PrefetchScalarGridSpec(
            num_scalar_prefetch=0,
            grid=(n_splits, tiles_per_split),
            in_specs=[
                pl.BlockSpec((tile_m, _LANES), in_map),
                pl.BlockSpec((tile_m, _LANES), in_map),
            ],
            out_specs=pl.BlockSpec((_SUBLANES, _LANES), lambda s, j: (s, 0)),
        ),
        compiler_params=pltpu.CompilerParams(
            dimension_semantics=("parallel", "arbitrary"),
            vmem_limit_bytes=_VMEM_LIMIT,
        ),
        cost_estimate=cost,
    )(p2, t2)

    # Tiny final cross-lane reduce + mean divide (1024 or 2048 floats).
    return jnp.sum(partials) / jnp.float32(n_elems)


def _reference_loss(pred, target, alpha=0.3):
    diff = pred.astype(jnp.float32) - target.astype(jnp.float32)
    mask = (diff < 0).astype(jnp.float32)
    weights = alpha * (1.0 - mask) + (1.0 - alpha) * mask
    return jnp.mean(weights * diff * diff)


if __name__ == "__main__":
    key = jax.random.PRNGKey(0)
    k_pred, k_tgt = jax.random.split(key)

    # Noise maps (B, C, H, W) like the PyTorch module expects.
    B, C, H, W = 2, 4, 16, 16
    pred = jax.random.normal(k_pred, (B, C, H, W), dtype=jnp.float32)
    target = jax.random.normal(k_tgt, (B, C, H, W), dtype=jnp.float32)

    loss = asymmetric_loss(pred, target, alpha=0.3)
    loss = jax.block_until_ready(loss)

    ref = _reference_loss(pred, target, alpha=0.3)
    assert jnp.allclose(loss, ref, rtol=1e-5, atol=1e-6), (loss, ref)

    print("KERNEL_OK")
</pallas_src>

<mosaic_0001>
module attributes {stable_mosaic.version = 11 : i64} {
  func.func @_asym_loss_kernel(%arg0: i32, %arg1: i32, %arg2: memref<16x128xf32, #tpu.memory_space<vmem>>, %arg3: memref<16x128xf32, #tpu.memory_space<vmem>>, %arg4: memref<8x128xf32, #tpu.memory_space<vmem>>) attributes {dimension_semantics = [#tpu.dimension_semantics<parallel>, #tpu.dimension_semantics<arbitrary>], iteration_bounds = array<i64: 1, 1>, scalar_prefetch = 0 : i64, scratch_operands = 0 : i64, tpu.core_type = #tpu.core_type<tc>, window_params = [{transform_indices = @transform_0, window_bounds = array<i64: 16, 128>}, {transform_indices = @transform_1, window_bounds = array<i64: 16, 128>}, {transform_indices = @transform_2, window_bounds = array<i64: 8, 128>}]} {
    %c0_i32 = arith.constant 0 : i32
    %0 = arith.cmpi eq, %arg1, %c0_i32 : i32
    %1 = arith.extui %0 : i1 to i32
    %c0_i32_0 = arith.constant 0 : i32
    %2 = arith.cmpi ne, %1, %c0_i32_0 : i32
    scf.if %2 {
      %cst_11 = arith.constant 0.000000e+00 : f32
      %24 = vector.broadcast %cst_11 : f32 to vector<8x128xf32>
      %c0_12 = arith.constant 0 : index
      %c0_13 = arith.constant 0 : index
      %25 = vector.load %arg4[%c0_12, %c0_13] : memref<8x128xf32, #tpu.memory_space<vmem>>, vector<8x128xf32>
      tpu.vector_store %arg4[%c0_12, %c0_13], %24 {strides = array<i32>} : memref<8x128xf32, #tpu.memory_space<vmem>>, vector<8x128xf32>,
    } else {
    }
    %c0 = arith.constant 0 : index
    %c0_1 = arith.constant 0 : index
    %3 = vector.load %arg4[%c0, %c0_1] : memref<8x128xf32, #tpu.memory_space<vmem>>, vector<8x128xf32>
    %cst = arith.constant 0.000000e+00 : f32
    %4 = vector.broadcast %cst : f32 to vector<8x128xf32>
    %cst_2 = arith.constant 0.699999988 : f32
    %cst_3 = arith.constant 3.000000e-01 : f32
    %c0_i32_4 = arith.constant 0 : i32
    %c16_i32 = arith.constant 16 : i32
    %5 = arith.muli %c0_i32_4, %c16_i32 : i32
    %6 = tpu.assume_multiple %5, 16 : i32
    %7 = arith.index_cast %6 : i32 to index
    %c0_5 = arith.constant 0 : index
    %8 = vector.load %arg2[%7, %c0_5] : memref<16x128xf32, #tpu.memory_space<vmem>>, vector<16x128xf32>
    %9 = arith.index_cast %6 : i32 to index
    %c0_6 = arith.constant 0 : index
    %10 = vector.load %arg3[%9, %c0_6] : memref<16x128xf32, #tpu.memory_space<vmem>>, vector<16x128xf32>
    %11 = arith.subf %8, %10 : vector<16x128xf32>
    %cst_7 = arith.constant 0.000000e+00 : f32
    %12 = vector.broadcast %cst_7 : f32 to vector<16x128xf32>
    %13 = arith.cmpf olt, %11, %12 : vector<16x128xf32>
    %14 = vector.broadcast %cst_2 : f32 to vector<16x128xf32>
    %15 = vector.broadcast %cst_3 : f32 to vector<16x128xf32>
    %16 = arith.select %13, %14, %15 : vector<16x128xi1>, vector<16x128xf32>
    %17 = arith.mulf %16, %11 : vector<16x128xf32>
    %18 = arith.mulf %17, %11 : vector<16x128xf32>
    %19 = vector.shape_cast %18 : vector<16x128xf32> to vector<2x8x128xf32>
    %cst_8 = arith.constant dense<0.000000e+00> : vector<8x128xf32>
    %20 = vector.multi_reduction <add>, %19, %cst_8 [0] : vector<2x8x128xf32> to vector<8x128xf32>
    %21 = arith.addf %4, %20 : vector<8x128xf32>
    %c1_i32 = arith.constant 1 : i32
    %22 = arith.addf %3, %21 : vector<8x128xf32>
    %c0_9 = arith.constant 0 : index
    %c0_10 = arith.constant 0 : index
    %23 = vector.load %arg4[%c0_9, %c0_10] : memref<8x128xf32, #tpu.memory_space<vmem>>, vector<8x128xf32>
    tpu.vector_store %arg4[%c0_9, %c0_10], %22 {strides = array<i32>} : memref<8x128xf32, #tpu.memory_space<vmem>>, vector<8x128xf32>,
    return
  }
  func.func @transform_0(%arg0: i32, %arg1: i32) -> (i32, i32) {
    %c1_i32 = arith.constant 1 : i32
    %0 = arith.muli %arg0, %c1_i32 : i32
    %1 = arith.addi %0, %arg1 : i32
    %c0_i32 = arith.constant 0 : i32
    %c0_i32_0 = arith.constant 0 : i32
    return %1, %c0_i32 : i32, i32
  }
  func.func @transform_1(%arg0: i32, %arg1: i32) -> (i32, i32) {
    %c1_i32 = arith.constant 1 : i32
    %0 = arith.muli %arg0, %c1_i32 : i32
    %1 = arith.addi %0, %arg1 : i32
    %c0_i32 = arith.constant 0 : i32
    %c0_i32_0 = arith.constant 0 : i32
    return %1, %c0_i32 : i32, i32
  }
  func.func @transform_2(%arg0: i32, %arg1: i32) -> (i32, i32) {
    %c0_i32 = arith.constant 0 : i32
    %c0_i32_0 = arith.constant 0 : i32
    return %arg0, %c0_i32 : i32, i32
  }
}

</mosaic_0001>

<bundles_post_ra>
// kernel: tpu_custom_call.1
= control target key start
LH: loop header
LB: loop body
LE: loop exit
PB: predicated region body
PF: predicated region fallthrough
CT: control target
= control target key end

     0   :  { %7 = vsyncpa [#allocation3], 0  ;;  %s228_s0 = inlined_call_operand.hbm [shape: f32[16,128], index: 0, kind: input, shape index: {}]   ;;  %s229_s1 = inlined_call_operand.hbm [shape: f32[16,128], index: 1, kind: input, shape index: {}]   ;;  %s230_s2 = inlined_call_operand.hbm [shape: f32[8,128], index: 2, kind: output, shape index: {}]  }
   0x1   :  { %8 = vsyncpa [#allocation6], 0 }
   0x2   :  { %9 = vsyncpa [#allocation4], 0  ;;  %s171_s9 = smov [#allocation2]   ;;  %s99_s13 = scalar_lea.hbm %s228_s0, 256 }
   0x3   :  { %s19_s10 = sshll.u32 %s171_s9, 4  ;;  %p100_p0 = scmp.ne.s32.totalorder %s228_s0, %s99_s13  ;;  %s20_s10 = int_to_ptr.vmem [resolvable:$true] %s19_s10 }
   0x4   :  { %p103_p1 = scmp.lt.u32.totalorder %s99_s13, %s228_s0 }
   0x6   :  { %p105_p2 = pnand %p103_p1, %p100_p0 }
   0x8   :  { %108 = shalt.err (!%p105_p2)
}
   0x9   :  { %s109_s18 = scalar_lea.vmem %s20_s10, 256  ;;  %p114_p4 = scmp.lt.s32.totalorder %s20_s10, %s20_s10 }
   0xa   :  { %p110_p3 = scmp.ne.s32.totalorder %s20_s10, %s109_s18  ;;  %p115_p5 = scmp.lt.s32.totalorder %s109_s18, %s109_s18 }
   0xc   :  { %p116_p6 = por %p115_p5, %p114_p4 }
   0xe   :  { %p117_p7 = pnand %p116_p6, %p110_p3 }
  0x10   :  { %120 = shalt.err (!%p117_p7)
}
  0x11   :  { %s172_s19 = smov 128   ;;  %s173_s20 = smov 8  }
  0x12   :  { %25 = dma.hbm_to_vmem [thread:$0]  %s228_s0, 256, %s20_s10, [#allocation3], %s172_s19, %s172_s19, %s173_s20  }
  0x13   :  { %s174_s23 = smov [#allocation5]   ;;  %s121_s27 = scalar_lea.hbm %s229_s1, 256 }
  0x14   :  { %s35_s24 = sshll.u32 %s174_s23, 4  ;;  %p122_p8 = scmp.ne.s32.totalorder %s229_s1, %s121_s27  ;;  %s36_s24 = int_to_ptr.vmem [resolvable:$true] %s35_s24 }
  0x15   :  { %p125_p9 = scmp.lt.u32.totalorder %s121_s27, %s229_s1 }
  0x17   :  { %p127_p10 = pnand %p125_p9, %p122_p8 }
  0x19   :  { %130 = shalt.err (!%p127_p10)
}
  0x1a   :  { %s131_s4 = scalar_lea.vmem %s36_s24, 256  ;;  %p136_p12 = scmp.lt.s32.totalorder %s36_s24, %s36_s24 }
  0x1b   :  { %p132_p11 = scmp.ne.s32.totalorder %s36_s24, %s131_s4  ;;  %p137_p13 = scmp.lt.s32.totalorder %s131_s4, %s131_s4 }
  0x1d   :  { %p138_p0 = por %p137_p13, %p136_p12 }
  0x1f   :  { %p139_p1 = pnand %p138_p0, %p132_p11 }
  0x21   :  { %142 = shalt.err (!%p139_p1)
}
  0x22   :  { %41 = dma.hbm_to_vmem [thread:$0]  %s229_s1, 256, %s36_s24, [#allocation6], %s172_s19, %s172_s19, %s173_s20  }
  0x23   :  { %165 = dma.done.wait [#allocation3], 256  }
  0x24   :  { %166 = vsyncadd [#allocation3], 4294967040 }
  0x25   :  { %167 = dma.done.wait [#allocation6], 256  }
  0x26   :  { %168 = vsyncadd [#allocation6], 4294967040  ;;  %v58_v0 = vld [vmem:[#allocation2] sm:$0xff]  ;;  %v59_v1 = vld [vmem:[#allocation2 + $0x8] sm:$0xff]  ;;  %v175_v6 = vmov 0.3  }
  0x27   :  { %v60_v2 = vld [vmem:[#allocation5] sm:$0xff]  ;;  %v61_v3 = vld [vmem:[#allocation5 + $0x8] sm:$0xff]  ;;  %s176_s1 = smov [#allocation7]  }
  0x28   :  { %v62_v4 = vsub.f32 %v58_v0, %v60_v2  ;;  %v63_v5 = vsub.f32 %v59_v1, %v61_v3  ;;  %s82_s6 = sshll.u32 %s176_s1, 4  ;;  %s83_s6 = int_to_ptr.vmem [resolvable:$true] %s82_s6 }
  0x29   :  { %s143_s7 = scalar_lea.vmem %s83_s6, 128  ;;  %p148_p3 = scmp.lt.s32.totalorder %s83_s6, %s83_s6 }
  0x2a   :  { %vm64_vm0 = vcmp.lt.f32.partialorder %v62_v4, 0.0  ;;  %vm65_vm1 = vcmp.lt.f32.partialorder %v63_v5, 0.0  ;;  %p144_p2 = scmp.ne.s32.totalorder %s83_s6, %s143_s7  ;;  %p149_p4 = scmp.lt.s32.totalorder %s143_s7, %s143_s7 }
  0x2b   :  { %v66_v7 = vsel %vm64_vm0, 0.7, %v175_v6  ;;  %v67_v8 = vsel %vm65_vm1, 0.7, %v175_v6 }
  0x2c   :  { %v68_v9 = vmul.f32 %v66_v7, %v62_v4  ;;  %v69_v10 = vmul.f32 %v67_v8, %v63_v5  ;;  %p150_p5 = por %p149_p4, %p148_p3 }
  0x2e   :  { %v70_v11 = vmul.f32 %v68_v9, %v62_v4  ;;  %v71_v12 = vmul.f32 %v69_v10, %v63_v5  ;;  %p151_p6 = pnand %p150_p5, %p144_p2 }
  0x30   :  { %v72_v13 = vadd.f32 %v71_v12, %v70_v11 }
  0x32   :  { %75 = vst [vmem:[#allocation7] sm:$0xff] %v72_v13 }
  0x33   :  { %154 = shalt.err (!%p151_p6)
}
  0x34   :  { %s155_s10 = scalar_lea.hbm %s230_s2, 128 }
  0x35   :  { %p156_p7 = scmp.ne.s32.totalorder %s230_s2, %s155_s10  ;;  %p159_p8 = scmp.lt.u32.totalorder %s155_s10, %s230_s2 }
  0x37   :  { %p161_p9 = pnand %p159_p8, %p156_p7 }
  0x39   :  { %164 = shalt.err (!%p161_p9)
}
  0x3a   :  { %85 = dma.vmem_to_hbm [thread:$0]  %s83_s6, 128, %s230_s2, [#allocation4]  }
  0x3b   :  { %169 = dma.done.wait [#allocation4], 128  }
  0x3c   :  { %170 = vsyncadd [#allocation4], 4294967168 }
  0x3d   :  { %89 = vsyncpa [#allocation3], 1 }
  0x3e   :  { %90 = vsyncpa [#allocation6], 1 }
  0x3f   :  { %91 = vsyncpa [#allocation4], 1 }

</bundles_post_ra>
